<compile_context>
chip_gen: v7x
topology: tpu7x:2x2x1
jax: 0.10.0
libtpu: 0.0.40
codegen_flags: <defaults>
</compile_context>

<pallas_src>
import functools

import jax
import jax.numpy as jnp
from jax import lax
from jax.experimental import pallas as pl
from jax.experimental.pallas import tpu as pltpu


def _roll_lanes(x, shift):
    """jnp.roll along the last (lane) axis with a non-negative static shift."""
    n = x.shape[-1]
    return pltpu.roll(x, shift % n, axis=x.ndim - 1)


def _convblock_kernel(x_ref, w_ref, b_ref, o_ref, *, H, W, Cin, Cout):
    # x_ref: (Cin, H*W)    f32   unpadded input, spatial plane flattened on lanes
    # w_ref: (Cout, 9*Cin) bf16  weights, (dh, dw, cin) flattened on the K axis
    # b_ref: (Cout, 1)     f32   bias
    # o_ref: (Cout, H*W)   f32   lane-dense output
    HW = H * W
    x = x_ref[...]                                   # (Cin, HW) f32

    # Lane-position masks for the reflection boundaries (computed once, reused).
    p = lax.broadcasted_iota(jnp.int32, (Cin, HW), 1)
    col = p % W
    is_j0 = col == 0                                  # j == 0   -> reflect to col 1
    is_jW = col == W - 1                              # j == W-1 -> reflect to col W-2
    is_i0 = p < W                                     # i == 0   -> reflect to row 1
    is_iH = p >= (H - 1) * W                          # i == H-1 -> reflect to row H-2

    # --- column taps (dj = -1, 0, +1): XLU rolls + VPU selects, lane-dense ---
    xl = _roll_lanes(x, 1)                            # value at column j-1 (wrap fixed below)
    xr = _roll_lanes(x, -1)                           # value at column j+1
    c_m1 = jnp.where(is_j0, xr, xl)                   # reflect col(-1) -> col 1
    c_0 = x
    c_p1 = jnp.where(is_jW, xl, xr)                   # reflect col(W)  -> col W-2

    # --- row taps (di = -1, 0, +1) on top of each column tap ---
    taps = []                                         # taps[dw] = (dh=0, dh=1, dh=2)
    for c_dj in (c_m1, c_0, c_p1):                    # dw = 0, 1, 2
        up = _roll_lanes(c_dj, W)                     # value at row i-1 (wrap fixed below)
        dn = _roll_lanes(c_dj, -W)                    # value at row i+1
        taps.append((jnp.where(is_i0, dn, up),        # dh = 0: reflect row(-1) -> row 1
                     c_dj,                            # dh = 1
                     jnp.where(is_iH, up, dn)))       # dh = 2: reflect row(H)  -> row H-2

    # K-order (dh, dw, cin) to match the prepared weights.
    slab = jnp.concatenate(
        [taps[dw][dh] for dh in range(3) for dw in range(3)], axis=0)
    slab = slab.astype(jnp.bfloat16)                  # (9*Cin, HW) bf16 MXU operand

    # Single MXU matmul, f32 accumulation, lane-dense (Cout, HW) result.
    acc = jnp.dot(w_ref[...], slab, preferred_element_type=jnp.float32)
    acc = acc + b_ref[...]                            # bias broadcast over lanes (f32)
    acc = jnp.maximum(acc, 0.01 * acc)                # LeakyReLU(0.01) as a single vmax
    o_ref[...] = acc.astype(o_ref.dtype)


def prepare_conv_block_params(weight_oihw, bias):
    """One-time parameter prep (hoisted out of the per-call hot path).

    OIHW (o, c, dh, dw) -> (o, dh, dw, c) -> (Cout, 9*Cin) in bf16; bias -> (Cout, 1) f32.
    """
    Cout, Cin = weight_oihw.shape[0], weight_oihw.shape[1]
    w2 = jnp.transpose(weight_oihw, (0, 2, 3, 1)).reshape(Cout, 9 * Cin)
    return w2.astype(jnp.bfloat16), bias.reshape(Cout, 1).astype(jnp.float32)


@jax.jit
def conv_block(x_nchw, w2_bf16, b2):
    """ConvBlock forward: reflection-pad(1) -> conv3x3 -> LeakyReLU(0.01).

    x_nchw:  (N, Cin, H, W)  f32
    w2_bf16: (Cout, 9*Cin)   bf16  (from prepare_conv_block_params)
    b2:      (Cout, 1)       f32
    returns: (N, Cout, H, W) f32
    """
    N, Cin, H, W = x_nchw.shape
    Cout = w2_bf16.shape[0]
    assert H >= 2 and W >= 2, "reflection pad(1) requires H >= 2 and W >= 2"
    HW = H * W

    x_flat = x_nchw.reshape(N, Cin, HW)               # free metadata reshape

    kernel = functools.partial(_convblock_kernel, H=H, W=W, Cin=Cin, Cout=Cout)

    out_flat = pl.pallas_call(
        kernel,
        out_shape=jax.ShapeDtypeStruct((N, Cout, HW), x_nchw.dtype),
        grid_spec=pltpu.PrefetchScalarGridSpec(
            num_scalar_prefetch=0,
            grid=(N,),
            in_specs=[
                pl.BlockSpec((None, Cin, HW), lambda n: (n, 0, 0)),
                pl.BlockSpec((Cout, 9 * Cin), lambda n: (0, 0)),
                pl.BlockSpec((Cout, 1), lambda n: (0, 0)),
            ],
            out_specs=pl.BlockSpec((None, Cout, HW), lambda n: (n, 0, 0)),
        ),
        compiler_params=pltpu.CompilerParams(
            dimension_semantics=("parallel",)),
    )(x_flat, w2_bf16, b2)

    return out_flat.reshape(N, Cout, H, W)            # row-major, output stays NCHW


if __name__ == "__main__":
    key = jax.random.PRNGKey(0)
    k_x, k_w, k_b = jax.random.split(key, 3)

    N, Cin, Cout, H, W = 2, 4, 8, 16, 16

    x = jax.random.normal(k_x, (N, Cin, H, W), dtype=jnp.float32)
    # Deterministic synthetic parameters (same shapes as nn.Conv2d(Cin, Cout, 3)).
    fan_in = Cin * 3 * 3
    bound = 1.0 / (fan_in ** 0.5)
    weight = jax.random.uniform(
        k_w, (Cout, Cin, 3, 3), minval=-bound, maxval=bound, dtype=jnp.float32)
    bias = jax.random.uniform(
        k_b, (Cout,), minval=-bound, maxval=bound, dtype=jnp.float32)

    w2, b2 = prepare_conv_block_params(weight, bias)  # one-time prep, outside hot path

    out = conv_block(x, w2, b2)
    jax.block_until_ready(out)

    # Sanity check against a pure-f32 JAX reference (kernel uses bf16 MXU operands
    # with f32 accumulation -> loosened tolerance).
    x_pad_ref = jnp.pad(x, ((0, 0), (0, 0), (1, 1), (1, 1)), mode="reflect")
    ref = jax.lax.conv_general_dilated(
        x_pad_ref, weight, window_strides=(1, 1), padding="VALID",
        dimension_numbers=("NCHW", "OIHW", "NCHW"),
    ) + bias.reshape(1, Cout, 1, 1)
    ref = jnp.where(ref > 0, ref, 0.01 * ref)
    assert out.shape == (N, Cout, H, W)
    assert jnp.allclose(out, ref, atol=5e-2, rtol=5e-2), float(jnp.max(jnp.abs(out - ref)))

    print("KERNEL_OK")
</pallas_src>

<mosaic_0001>
module attributes {stable_mosaic.version = 11 : i64} {
  func.func @_convblock_kernel(%arg0: i32, %arg1: memref<1x4x256xf32, #tpu.memory_space<vmem>>, %arg2: memref<8x36xbf16, #tpu.memory_space<vmem>>, %arg3: memref<8x1xf32, #tpu.memory_space<vmem>>, %arg4: memref<1x8x256xf32, #tpu.memory_space<vmem>>) attributes {dimension_semantics = [#tpu.dimension_semantics<parallel>], iteration_bounds = array<i64: 2>, scalar_prefetch = 0 : i64, scratch_operands = 0 : i64, tpu.core_type = #tpu.core_type<tc>, window_params = [{transform_indices = @transform_0, window_bounds = array<i64: 1, 4, 256>}, {pipeline_mode = #tpu.pipeline_mode<synchronous>, transform_indices = @transform_1, window_bounds = array<i64: 8, 36>}, {pipeline_mode = #tpu.pipeline_mode<synchronous>, transform_indices = @transform_2, window_bounds = array<i64: 8, 1>}, {transform_indices = @transform_3, window_bounds = array<i64: 1, 8, 256>}]} {
    %c0 = arith.constant 0 : index
    %c0_0 = arith.constant 0 : index
    %c0_1 = arith.constant 0 : index
    %0 = vector.load %arg1[%c0, %c0_0, %c0_1] : memref<1x4x256xf32, #tpu.memory_space<vmem>>, vector<1x4x256xf32>
    %1 = vector.shape_cast %0 : vector<1x4x256xf32> to vector<4x256xf32>
    %2 = tpu.iota {dimensions = array<i32: 1>} : vector<4x256xi32>
    %c16_i32 = arith.constant 16 : i32
    %c0_i32 = arith.constant 0 : i32
    %3 = arith.cmpi eq, %c16_i32, %c0_i32 : i32
    %c1_i32 = arith.constant 1 : i32
    %4 = arith.select %3, %c1_i32, %c16_i32 : i32
    %5 = vector.broadcast %4 : i32 to vector<4x256xi32>
    %6 = arith.remsi %2, %5 : vector<4x256xi32>
    %c0_i32_2 = arith.constant 0 : i32
    %7 = vector.broadcast %c0_i32_2 : i32 to vector<4x256xi32>
    %8 = arith.cmpi ne, %6, %7 : vector<4x256xi32>
    %c0_i32_3 = arith.constant 0 : i32
    %9 = vector.broadcast %c0_i32_3 : i32 to vector<4x256xi32>
    %10 = arith.cmpi slt, %6, %9 : vector<4x256xi32>
    %c0_i32_4 = arith.constant 0 : i32
    %11 = arith.cmpi slt, %4, %c0_i32_4 : i32
    %12 = vector.broadcast %11 : i1 to vector<4x256xi1>
    %13 = vector.broadcast %12 : vector<4x256xi1> to vector<4x256xi1>
    %14 = arith.xori %10, %13 : vector<4x256xi1>
    %15 = arith.andi %14, %8 : vector<4x256xi1>
    %16 = vector.broadcast %4 : i32 to vector<4x256xi32>
    %17 = arith.addi %6, %16 : vector<4x256xi32>
    %18 = arith.select %15, %17, %6 : vector<4x256xi1>, vector<4x256xi32>
    %c0_i32_5 = arith.constant 0 : i32
    %19 = vector.broadcast %c0_i32_5 : i32 to vector<4x256xi32>
    %20 = arith.cmpi eq, %18, %19 : vector<4x256xi32>
    %c15_i32 = arith.constant 15 : i32
    %21 = vector.broadcast %c15_i32 : i32 to vector<4x256xi32>
    %22 = arith.cmpi eq, %18, %21 : vector<4x256xi32>
    %c16_i32_6 = arith.constant 16 : i32
    %23 = vector.broadcast %c16_i32_6 : i32 to vector<4x256xi32>
    %24 = arith.cmpi slt, %2, %23 : vector<4x256xi32>
    %c240_i32 = arith.constant 240 : i32
    %25 = vector.broadcast %c240_i32 : i32 to vector<4x256xi32>
    %26 = arith.cmpi sge, %2, %25 : vector<4x256xi32>
    %c1_i32_7 = arith.constant 1 : i32
    %27 = tpu.dynamic_rotate %1 by %c1_i32_7 dim 1 : vector<4x256xf32>, i32 -> vector<4x256xf32>
    %c255_i32 = arith.constant 255 : i32
    %28 = tpu.dynamic_rotate %1 by %c255_i32 dim 1 : vector<4x256xf32>, i32 -> vector<4x256xf32>
    %29 = arith.select %20, %28, %27 : vector<4x256xi1>, vector<4x256xf32>
    %30 = arith.select %22, %27, %28 : vector<4x256xi1>, vector<4x256xf32>
    %c16_i32_8 = arith.constant 16 : i32
    %31 = tpu.dynamic_rotate %29 by %c16_i32_8 dim 1 : vector<4x256xf32>, i32 -> vector<4x256xf32>
    %c240_i32_9 = arith.constant 240 : i32
    %32 = tpu.dynamic_rotate %29 by %c240_i32_9 dim 1 : vector<4x256xf32>, i32 -> vector<4x256xf32>
    %33 = arith.select %24, %32, %31 : vector<4x256xi1>, vector<4x256xf32>
    %34 = arith.select %26, %31, %32 : vector<4x256xi1>, vector<4x256xf32>
    %c16_i32_10 = arith.constant 16 : i32
    %35 = tpu.dynamic_rotate %1 by %c16_i32_10 dim 1 : vector<4x256xf32>, i32 -> vector<4x256xf32>
    %c240_i32_11 = arith.constant 240 : i32
    %36 = tpu.dynamic_rotate %1 by %c240_i32_11 dim 1 : vector<4x256xf32>, i32 -> vector<4x256xf32>
    %37 = arith.select %24, %36, %35 : vector<4x256xi1>, vector<4x256xf32>
    %38 = arith.select %26, %35, %36 : vector<4x256xi1>, vector<4x256xf32>
    %c16_i32_12 = arith.constant 16 : i32
    %39 = tpu.dynamic_rotate %30 by %c16_i32_12 dim 1 : vector<4x256xf32>, i32 -> vector<4x256xf32>
    %c240_i32_13 = arith.constant 240 : i32
    %40 = tpu.dynamic_rotate %30 by %c240_i32_13 dim 1 : vector<4x256xf32>, i32 -> vector<4x256xf32>
    %41 = arith.select %24, %40, %39 : vector<4x256xi1>, vector<4x256xf32>
    %42 = arith.select %26, %39, %40 : vector<4x256xi1>, vector<4x256xf32>
    %43 = tpu.concatenate %33, %37, %41, %29, %1, %30, %34, %38, %42 in 0 : vector<4x256xf32>, vector<4x256xf32>, vector<4x256xf32>, vector<4x256xf32>, vector<4x256xf32>, vector<4x256xf32>, vector<4x256xf32>, vector<4x256xf32>, vector<4x256xf32> -> vector<36x256xf32>
    %44 = arith.truncf %43 : vector<36x256xf32> to vector<36x256xbf16>
    %c0_14 = arith.constant 0 : index
    %c0_15 = arith.constant 0 : index
    %45 = vector.load %arg2[%c0_14, %c0_15] : memref<8x36xbf16, #tpu.memory_space<vmem>>, vector<8x36xbf16>
    %cst = arith.constant dense<0.000000e+00> : vector<8x256xf32>
    %46 = tpu.matmul %45, %44, %cst {dimension_numbers = #tpu.dot_dimension_numbers<[1], [0], [0], [1], [0, 0, 1, 1], [], []>} : vector<8x36xbf16>, vector<36x256xbf16>, vector<8x256xf32> -> vector<8x256xf32>
    %c0_16 = arith.constant 0 : index
    %c0_17 = arith.constant 0 : index
    %47 = vector.load %arg3[%c0_16, %c0_17] : memref<8x1xf32, #tpu.memory_space<vmem>>, vector<8x1xf32>
    %48 = vector.broadcast %47 : vector<8x1xf32> to vector<8x256xf32>
    %49 = arith.addf %46, %48 : vector<8x256xf32>
    %cst_18 = arith.constant 0.00999999977 : f32
    %50 = vector.broadcast %cst_18 : f32 to vector<8x256xf32>
    %51 = arith.mulf %50, %49 : vector<8x256xf32>
    %52 = arith.maximumf %49, %51 : vector<8x256xf32>
    %c0_19 = arith.constant 0 : index
    %c0_20 = arith.constant 0 : index
    %c0_21 = arith.constant 0 : index
    %53 = vector.load %arg4[%c0_19, %c0_20, %c0_21] : memref<1x8x256xf32, #tpu.memory_space<vmem>>, vector<1x8x256xf32>
    %54 = vector.shape_cast %53 : vector<1x8x256xf32> to vector<8x256xf32>
    %55 = vector.shape_cast %52 : vector<8x256xf32> to vector<1x8x256xf32>
    tpu.vector_store %arg4[%c0_19, %c0_20, %c0_21], %55 {strides = array<i32>} : memref<1x8x256xf32, #tpu.memory_space<vmem>>, vector<1x8x256xf32>,
    return
  }
  func.func @transform_0(%arg0: i32) -> (i32, i32, i32) {
    %c0_i32 = arith.constant 0 : i32
    %c0_i32_0 = arith.constant 0 : i32
    %c0_i32_1 = arith.constant 0 : i32
    return %arg0, %c0_i32, %c0_i32_0 : i32, i32, i32
  }
  func.func @transform_1(%arg0: i32) -> (i32, i32) {
    %c0_i32 = arith.constant 0 : i32
    %c0_i32_0 = arith.constant 0 : i32
    %c0_i32_1 = arith.constant 0 : i32
    return %c0_i32, %c0_i32_0 : i32, i32
  }
  func.func @transform_2(%arg0: i32) -> (i32, i32) {
    %c0_i32 = arith.constant 0 : i32
    %c0_i32_0 = arith.constant 0 : i32
    %c0_i32_1 = arith.constant 0 : i32
    return %c0_i32, %c0_i32_0 : i32, i32
  }
  func.func @transform_3(%arg0: i32) -> (i32, i32, i32) {
    %c0_i32 = arith.constant 0 : i32
    %c0_i32_0 = arith.constant 0 : i32
    %c0_i32_1 = arith.constant 0 : i32
    return %arg0, %c0_i32, %c0_i32_0 : i32, i32, i32
  }
}

</mosaic_0001>

<bundles_post_ra>
// kernel: conv_block.1
= control target key start
LH: loop header
LB: loop body
LE: loop exit
PB: predicated region body
PF: predicated region fallthrough
CT: control target
= control target key end

     0   :  { %s540_s12 = smov 0   ;;  %s647_s0 = inlined_call_operand.vmem [shape: f32[2,4,256], index: 0, kind: input, shape index: {}]   ;;  %s648_s1 = inlined_call_operand.vmem [shape: bf16[8,36], index: 1, kind: input, shape index: {}]   ;;  %s649_s2 = inlined_call_operand.vmem [shape: f32[8,1], index: 2, kind: input, shape index: {}]   ;;  %s650_s3 = inlined_call_operand.vmem [shape: f32[2,8,256], index: 3, kind: output, shape index: {}]  }
   0x1 LB: > { %s437_s13 = sadd.s32 4294967295, %s513_s12   ;;  %p441_p0 = scmp.ge.s32.totalorder %s513_s12, 1  ;;  %s513_s12 = sphi %s540_s12, %s13_s12  }
   0x2   : > { %p137_p1 = scmp.lt.s32.totalorder %s513_s12, 3 }
   0x4   : > { %p138_p2 = pnand %p441_p0, %p137_p1 }
   0x5   : > { %p161_p3 = scmp.lt.s32.totalorder (!%p138_p2), %s437_s13, 1  ;;  %s515_s18 = smov (!%p138_p2), 1   ;;  %v173_v3 = vlaneseq (!%p138_p2)  ;;  %v519_v24 = vmov (!%p138_p2), 0   ;;  %v318_v25 = vld [vmem:[%s649_s2] sm:$0xff] (!%p138_p2)  ;;  %vm302_vm9 = vcmask (!%p138_p2), 1043456   ;;  %vm328_vm10 = vcmask (!%p138_p2), 1041408  }
   0x6   : > { %141 = sbr.rel (%p138_p2) target bundleno = 503 (0x1f7), region = 32  ;;  %s516_s19 = smov (!%p138_p2), 16   ;;  %367 = vmatprep.mubr.bf16.mxu0 (!%p138_p2), %v519_v24  ;;  %505 = vset.pattern.permute.xlu0 (!%p138_p2), %v519_v24  ;;  %vm324_vm11 = vcmask (!%p138_p2), 293888  }
   0x7   : > { %s517_s20 = smov (!%p138_p2), 127   ;;  %s518_s21 = smov (!%p138_p2), 112   ;;  %v564_v4 = vand.u32 (!%p138_p2), 127, %v173_v3 }
   0x9   : > { %v567_v5 = vadd.s32 (!%p138_p2), 128, %v564_v4  ;;  %v180_v7 = vand.u32 (!%p138_p2), 15, %v564_v4  ;;  %vm215_vm0 = vcmp.lt.s32.totalorder (!%p138_p2), %v564_v4, 1  ;;  %vm222_vm1 = vcmp.lt.s32.totalorder (!%p138_p2), %v564_v4, 127 }
   0xa   : > { %vm204_vm6 = vcmp.lt.s32.totalorder (!%p138_p2), %v564_v4, 16  ;;  %vm239_vm7 = vcmp.lt.s32.totalorder (!%p138_p2), %v564_v4, 112 }
   0xb   : > { %v187_v8 = vand.u32 (!%p138_p2), 15, %v567_v5  ;;  %vm200_vm2 = vcmp.eq.s32.totalorder (!%p138_p2), %v180_v7, 0  ;;  %vm202_vm4 = vcmp.eq.s32.totalorder (!%p138_p2), %v180_v7, 15  ;;  %vm207_vm8 = vcmp.ge.s32.totalorder (!%p138_p2), %v567_v5, 240 }
   0xd   : > { %s652_s13 = smov (!%p161_p3, %s437_s13), 1  ;;  %vm201_vm3 = vcmp.eq.s32.totalorder %v187_v8, 0  ;;  %vm203_vm5 = vcmp.eq.s32.totalorder %v187_v8, 15 }
   0xe   : > { %s450_s14 = sshll.u32 %s652_s13, 3  ;;  %s451_s26 = sshll.u32 %s652_s13, 4 }
   0xf   : > { %s165_s17 = scalar_lea.vmem %s647_s0, %s450_s14  ;;  %s170_s29 = scalar_lea.vmem %s650_s3, %s451_s26 }
  0x10   : > { %v554_v0 = vld [vmem:[%s165_s17] sm:$0xff] }
  0x11   : > { %v558_v1 = vcombine.high %v554_v0, %v554_v0 }
  0x13   : > { %v465_v2 = vpack.i.bf16 %v558_v1, %v554_v0 }
  0x15   : > { %466 = vrot.lane.b32.xlu0 %v465_v2, %s515_s18  ;;  %476 = vrot.lane.b32.xlu1 %v465_v2, %s516_s19 }
  0x19   : > { %471 = vrot.lane.b32.xlu0 %v465_v2, %s517_s20  ;;  %481 = vrot.lane.b32.xlu1 %v465_v2, %s518_s21 }
  0x87   : > { %v467_v6 = vpop.permute.xlu0 %466  ;;  %v477_v26 = vpop.permute.xlu1 %476 }
  0x88   : > { %v469_v9 = vunpack.i.h.bf16 %v467_v6  ;;  %v468_v10 = vunpack.i.l.bf16 %v467_v6  ;;  %v479_v28 = vunpack.i.h.bf16 %v477_v26  ;;  %v478_v29 = vunpack.i.l.bf16 %v477_v26 }
  0x8a   : > { %v216_v14 = vsel %vm215_vm0, %v468_v10, %v469_v9  ;;  %v217_v15 = vsel %vm215_vm0, %v469_v9, %v468_v10  ;;  %v250_v32 = vsel %vm204_vm6, %v478_v29, %v479_v28  ;;  %v251_v34 = vsel %vm204_vm6, %v479_v28, %v478_v29 }
  0x8b   : > { %v472_v11 = vpop.permute.xlu0 %471  ;;  %v482_v27 = vpop.permute.xlu1 %481  ;;  %v281_v40 = vrot.slane %v250_v32, 4 }
  0x8c   : > { %v474_v12 = vunpack.i.h.bf16 %v472_v11  ;;  %v473_v13 = vunpack.i.l.bf16 %v472_v11  ;;  %v484_v30 = vunpack.i.h.bf16 %v482_v27  ;;  %v483_v31 = vunpack.i.l.bf16 %v482_v27 }
  0x8e   : > { %v223_v16 = vsel %vm222_vm1, %v473_v13, %v474_v12  ;;  %v224_v17 = vsel %vm222_vm1, %v474_v12, %v473_v13  ;;  %v257_v33 = vsel %vm239_vm7, %v484_v30, %v483_v31  ;;  %v256_v35 = vsel %vm239_vm7, %v483_v31, %v484_v30 }
  0x8f   : > { %v573_v18 = vsel %vm200_vm2, %v223_v16, %v217_v15  ;;  %v575_v19 = vsel %vm201_vm3, %v224_v17, %v216_v14  ;;  %v227_v21 = vsel %vm202_vm4, %v217_v15, %v223_v16  ;;  %v228_v22 = vsel %vm203_vm5, %v216_v14, %v224_v17 }
  0x90   : > { %v490_v20 = vpack.i.bf16 %v575_v19, %v573_v18  ;;  %v500_v23 = vpack.i.bf16 %v228_v22, %v227_v21  ;;  %v292_v36 = vrot.slane %v227_v21, 4  ;;  %v293_v37 = vrot.slane %v228_v22, 4  ;;  %v317_v22 = vld [vmem:[%s648_s1] sm:$0xf] }
  0x91   : > { %v261_v41 = vsel %vm207_vm8, %v250_v32, %v257_v33  ;;  %v298_v46 = vrot.slane %v256_v35, 4  ;;  %v287_v47 = vrot.slane %v575_v19, 4  ;;  %v258_v48 = vsel %vm204_vm6, %v256_v35, %v251_v34 }
  0x92   : > { %491 = vrot.lane.b32.xlu1 %v490_v20, %s518_s21  ;;  %486 = vrot.lane.b32.xlu0 %v490_v20, %s516_s19  ;;  %v286_v49 = vrot.slane %v573_v18, 4  ;;  %v299_v57 = vrot.slane %v261_v41, 4  ;;  %v307_v58 = vsel %vm302_vm9, %v554_v0, %v292_v36  ;;  %v280_v3 = vrot.slane %v258_v48, 4 }
  0x93   : > { %v308_v10 = vsel %vm302_vm9, %v558_v1, %v293_v37 }
  0x96   : > { %501 = vrot.lane.b32.xlu1 %v500_v23, %s518_s21  ;;  %496 = vrot.lane.b32.xlu0 %v500_v23, %s516_s19 }
  0x9a   : > { %321 = vperm.xlu0 %505, %v318_v25  }
 0x104   : > { %v492_v38 = vpop.permute.xlu1 %491  ;;  %v487_v39 = vpop.permute.xlu0 %486 }
 0x105   : > { %v494_v42 = vunpack.i.h.bf16 %v492_v38  ;;  %v493_v43 = vunpack.i.l.bf16 %v492_v38  ;;  %v489_v44 = vunpack.i.h.bf16 %v487_v39  ;;  %v488_v45 = vunpack.i.l.bf16 %v487_v39 }
 0x107   : > { %v240_v50 = vsel %vm239_vm7, %v493_v43, %v494_v42  ;;  %v241_v51 = vsel %vm239_vm7, %v494_v42, %v493_v43  ;;  %v234_v52 = vsel %vm204_vm6, %v489_v44, %v488_v45  ;;  %v233_v53 = vsel %vm204_vm6, %v488_v45, %v489_v44 }
 0x108   : > { %v502_v54 = vpop.permute.xlu1 %501  ;;  %v497_v55 = vpop.permute.xlu0 %496  ;;  %v245_v56 = vsel %vm207_vm8, %v233_v53, %v241_v51  ;;  %v309_v59 = vsel %vm302_vm9, %v240_v50, %v298_v46  ;;  %v242_v2 = vsel %vm204_vm6, %v240_v50, %v234_v52  ;;  %v304_v11 = vsel %vm302_vm9, %v233_v53, %v281_v40 }
 0x109   : > { %v504_v60 = vunpack.i.h.bf16 %v502_v54  ;;  %v503_v61 = vunpack.i.l.bf16 %v502_v54  ;;  %v499_v62 = vunpack.i.h.bf16 %v497_v55  ;;  %v498_v63 = vunpack.i.l.bf16 %v497_v55 }
 0x10a   : > { %v310_v6 = vsel %vm302_vm9, %v245_v56, %v299_v57  ;;  %v313_v7 = vpack.c.bf16 %v309_v59, %v307_v58  ;;  %v303_v17 = vsel %vm302_vm9, %v242_v2, %v280_v3 }
 0x10b   : > { %v272_v8 = vsel %vm239_vm7, %v503_v61, %v504_v60  ;;  %v267_v9 = vsel %vm204_vm6, %v499_v62, %v498_v63  ;;  %v266_v0 = vsel %vm204_vm6, %v498_v63, %v499_v62  ;;  %v314_v14 = vpack.c.bf16 %v310_v6, %v308_v10 }
 0x10c   : > { %v306_v12 = vsel %vm302_vm9, %v266_v0, %v287_v47  ;;  %v274_v13 = vsel %vm204_vm6, %v272_v8, %v267_v9  ;;  %v273_v15 = vsel %vm239_vm7, %v504_v60, %v503_v61  ;;  %v315_v21 = vpack.c.bf16 %v272_v8, %v272_v8 }
 0x10d   : > { %v312_v16 = vpack.c.bf16 %v306_v12, %v304_v11  ;;  %v305_v18 = vsel %vm302_vm9, %v274_v13, %v286_v49  ;;  %v277_v1 = vsel %vm207_vm8, %v266_v0, %v273_v15 }
 0x10e   : > { %v311_v19 = vpack.c.bf16 %v305_v18, %v303_v17  ;;  %v316_v20 = vpack.c.bf16 %v277_v1, %v277_v1  ;;  %v330_v4 = vsel %vm328_vm10, %v315_v21, 0 }
 0x10f   : > { %335 = vmatprep.subr.bf16.mxu0 %v312_v16 }
 0x110   : > { %336 = vmatpush1.bf16.msra.mxu0 %v311_v19 }
 0x111   : > { %337 = vmatprep.subr.bf16.mxu0 %v314_v14 }
 0x114   : > { %338 = vmatpush1.bf16.msra.mxu0 %v313_v7 }
 0x115   : > { %446 = vmatprep.subr.msk.bf16.mxu0 %vm328_vm10, %v316_v20 }
 0x118   : > { %340 = vmatpush1.bf16.msra.mxu0 %v330_v4 }
 0x119   : > { %v322_v23 = vpop.permute.xlu0 %321 }
 0x11b   : > { %447 = vmatmul.mubr.msk.bf16.vlgmr.msra.gmra.mrb[0].mxu0 %vm324_vm11, %v317_v22 }
 0x1ee   : > { %v369_v24 = vpop.f32.mrb[0].mxu0 }
 0x1ef   : > { %v370_v5 = vadd.f32 %v369_v24, %v322_v23  ;;  %v371_v25 = vpop.f32.mrb[1].mxu0 }
 0x1f0   : > { %v372_v26 = vadd.f32 %v371_v25, %v322_v23  ;;  %v373_v27 = vpop.f32.mrb[2].mxu0 }
 0x1f1   : > { %v376_v28 = vmul.f32 0.01, %v370_v5  ;;  %v374_v29 = vpop.f32.mrb[3].mxu0 }
 0x1f2   : > { %v377_v30 = vmul.f32 0.01, %v372_v26 }
 0x1f3   : > { %v378_v31 = vmax.f32 %v370_v5, %v376_v28 }
 0x1f4   : > { %v379_v32 = vmax.f32 %v372_v26, %v377_v30 }
 0x1f5   : > { %380 = vst [vmem:[%s170_s29] sm:$0xff] %v378_v31 }
 0x1f6   : > { %381 = vst [vmem:[%s170_s29 + $0x8] sm:$0xff] %v379_v32 }
 0x1f7 PF: > { %s13_s12 = sadd.s32 1, %s513_s12  }
 0x1f8   : > { %p10_p4 = scmp.ge.s32.totalorder %s13_s12, 4  }
 0x1fa   :  { %12 = sbr.rel (!%p10_p4) target bundleno = 1 (0x1), region = 62 }

</bundles_post_ra>
